<compile_context>
chip_gen: v7x
topology: tpu7x:2x2x1
jax: 0.10.0
libtpu: 0.0.40
codegen_flags: <defaults>
</compile_context>

<pallas_src>
import jax
import jax.numpy as jnp
from jax.experimental import pallas as pl
from jax.experimental.pallas import tpu as pltpu


def _mlp_kernel(x_ref, w1_ref, b1_ref, w2_ref, b2_ref, w3_ref, b3_ref, o_ref):
    """Fused 3-layer MLP on one (row_tile, in_dim) tile of rows."""
    x = x_ref[...]
    act_dtype = x.dtype  # keep activations in the input dtype between layers

    h = jnp.dot(x, w1_ref[...], preferred_element_type=jnp.float32)
    h = jnp.maximum(h + b1_ref[...], 0.0).astype(act_dtype)

    h = jnp.dot(h, w2_ref[...], preferred_element_type=jnp.float32)
    h = jnp.maximum(h + b2_ref[...], 0.0).astype(act_dtype)

    out = jnp.dot(h, w3_ref[...], preferred_element_type=jnp.float32) + b3_ref[...]
    o_ref[...] = out.astype(o_ref.dtype)


def _round_up(n, m):
    return ((n + m - 1) // m) * m


def _default_row_tile(in_dim, out_dim, itemsize):
    """Rows per grid step: big enough to amortize the ~0.35us step overhead,
    small enough to keep the double-buffered x/out blocks well under scoped
    VMEM. Clamped to [1024, 4096]."""
    bytes_per_row = 2 * (in_dim + out_dim) * itemsize  # double-buffered in+out
    rt = (8 << 20) // max(bytes_per_row, 1)
    return int(max(1024, min(rt, 4096)))


def mlp_forward(x, params, *, row_tile=None):
    """Apply the MLP to x of shape (..., input_dim) using a fused Pallas kernel.

    params: dict with w1,b1,w2,b2,w3,b3 ; wN is (in, out), bN is (1, out).
    row_tile: optional override for rows per grid step (auto-derived if None).
    """
    w1, b1 = params["w1"], params["b1"]
    w2, b2 = params["w2"], params["b2"]
    w3, b3 = params["w3"], params["b3"]

    in_dim = w1.shape[0]
    out_dim = w3.shape[1]

    lead_shape = x.shape[:-1]
    n_rows = 1
    for d in lead_shape:
        n_rows *= d
    x2d = x.reshape(n_rows, in_dim)

    itemsize = jnp.dtype(x.dtype).itemsize
    # Sublane packing: f32 -> 8, bf16 -> 16, int8 -> 32.
    sublane = 32 // itemsize

    # Row tile: sublane-aligned; capped so the grid has >= 2 steps whenever
    # there are enough rows (keeps both v7x TensorCores busy). No HBM padding
    # of x: Pallas masks the ragged last block at element granularity.
    if row_tile is None:
        row_tile = _default_row_tile(in_dim, out_dim, itemsize)
    row_tile = _round_up(max(int(row_tile), 1), sublane)
    two_step_cap = max(sublane, _round_up(-(-n_rows // 2), sublane))
    row_tile = min(row_tile, two_step_cap)

    grid = (pl.cdiv(n_rows, row_tile),)

    # Full-array blocks for the (small) weights/biases; constant index_map keeps
    # them VMEM-resident across grid steps.
    def _const_spec(arr):
        nd = arr.ndim
        return pl.BlockSpec(arr.shape, lambda i, _nd=nd: (0,) * _nd)

    # VMEM budget guard (matters on v7x's 64 MiB or when hidden_dim grows):
    weight_bytes = sum(
        int(a.size) * jnp.dtype(a.dtype).itemsize for a in (w1, b1, w2, b2, w3, b3)
    )
    block_bytes = 2 * row_tile * (in_dim + out_dim) * itemsize  # double-buffered
    vmem_limit = int(min(max(2 * weight_bytes + block_bytes + (8 << 20), 32 << 20),
                         64 << 20))

    out2d = pl.pallas_call(
        _mlp_kernel,
        out_shape=jax.ShapeDtypeStruct((n_rows, out_dim), x.dtype),
        grid_spec=pltpu.PrefetchScalarGridSpec(
            num_scalar_prefetch=0,
            grid=grid,
            in_specs=[
                pl.BlockSpec((row_tile, in_dim), lambda i: (i, 0)),
                _const_spec(w1), _const_spec(b1),
                _const_spec(w2), _const_spec(b2),
                _const_spec(w3), _const_spec(b3),
            ],
            out_specs=pl.BlockSpec((row_tile, out_dim), lambda i: (i, 0)),
        ),
        compiler_params=pltpu.CompilerParams(
            dimension_semantics=("parallel",),
            vmem_limit_bytes=vmem_limit,
        ),
    )(x2d, w1, b1, w2, b2, w3, b3)

    return out2d.reshape(*lead_shape, out_dim)


def init_mlp_params(key, input_dim, hidden_dim, output_dim, num_layers=3,
                    dtype=jnp.float32):
    """Deterministic init mirroring nn.Linear's default (uniform +/- 1/sqrt(fan_in)).

    Weights are stored transposed: (in_features, out_features).
    """
    assert num_layers == 3, "this script instantiates the common 3-layer MLP head"
    dims = [input_dim] + [hidden_dim] * (num_layers - 1) + [output_dim]
    params = {}
    for li in range(num_layers):
        fan_in, fan_out = dims[li], dims[li + 1]
        key, kw, kb = jax.random.split(key, 3)
        bound = 1.0 / (fan_in ** 0.5)
        w = jax.random.uniform(kw, (fan_in, fan_out), dtype, -bound, bound)
        b = jax.random.uniform(kb, (1, fan_out), dtype, -bound, bound)
        params[f"w{li + 1}"] = w
        params[f"b{li + 1}"] = b
    return params


def mlp_reference(x, params):
    """Plain-JAX reference for correctness checking."""
    h = jnp.maximum(x @ params["w1"] + params["b1"][0], 0.0)
    h = jnp.maximum(h @ params["w2"] + params["b2"][0], 0.0)
    return h @ params["w3"] + params["b3"][0]


if __name__ == "__main__":
    key = jax.random.PRNGKey(0)
    k_param, k_x1, k_x2 = jax.random.split(key, 3)

    # Small shapes consistent with the module's typical use
    # (e.g. bbox head: input_dim=hidden_dim=32, output_dim=4, num_layers=3).
    batch, seq = 2, 8
    input_dim, hidden_dim, output_dim, num_layers = 32, 32, 4, 3

    params = init_mlp_params(k_param, input_dim, hidden_dim, output_dim, num_layers)

    # Case 1: aligned row count, auto row_tile.
    x = jax.random.normal(k_x1, (batch, seq, input_dim), dtype=jnp.float32)
    out = jax.block_until_ready(mlp_forward(x, params))
    ref = mlp_reference(x, params)
    assert out.shape == (batch, seq, output_dim), out.shape
    assert jnp.allclose(out, ref, atol=1e-5, rtol=1e-5), "mismatch vs reference (aligned)"

    # Case 2: ragged row count (15 rows) — exercises the masked partial last block
    # (no HBM pad of x) and the >=2-grid-step cap.
    x2 = jax.random.normal(k_x2, (3, 5, input_dim), dtype=jnp.float32)
    out2 = jax.block_until_ready(mlp_forward(x2, params))
    ref2 = mlp_reference(x2, params)
    assert out2.shape == (3, 5, output_dim), out2.shape
    assert jnp.allclose(out2, ref2, atol=1e-5, rtol=1e-5), "mismatch vs reference (ragged)"

    # Case 3: bf16 I/O (halves HBM traffic on v6e/v7x); f32 MXU accumulation kept.
    x_bf16 = x.astype(jnp.bfloat16)
    params_bf16 = {k: v.astype(jnp.bfloat16) for k, v in params.items()}
    out3 = jax.block_until_ready(mlp_forward(x_bf16, params_bf16))
    ref3 = mlp_reference(x_bf16.astype(jnp.float32),
                         {k: v.astype(jnp.float32) for k, v in params_bf16.items()})
    assert out3.shape == (batch, seq, output_dim), out3.shape
    assert jnp.allclose(out3.astype(jnp.float32), ref3, atol=1e-1, rtol=1e-1), \
        "mismatch vs reference (bf16)"

    # TODO(synk): use_norm=True branch (LayerNorm + dropout) not implemented;
    # the module's default/inference path (use_norm=False) is what this covers.

    print("KERNEL_OK")
</pallas_src>

<mosaic_0001>
module attributes {stable_mosaic.version = 11 : i64} {
  func.func @_mlp_kernel(%arg0: i32, %arg1: memref<8x32xf32, #tpu.memory_space<vmem>>, %arg2: memref<32x32xf32, #tpu.memory_space<vmem>>, %arg3: memref<1x32xf32, #tpu.memory_space<vmem>>, %arg4: memref<32x32xf32, #tpu.memory_space<vmem>>, %arg5: memref<1x32xf32, #tpu.memory_space<vmem>>, %arg6: memref<32x4xf32, #tpu.memory_space<vmem>>, %arg7: memref<1x4xf32, #tpu.memory_space<vmem>>, %arg8: memref<8x4xf32, #tpu.memory_space<vmem>>) attributes {dimension_semantics = [#tpu.dimension_semantics<parallel>], iteration_bounds = array<i64: 2>, scalar_prefetch = 0 : i64, scratch_operands = 0 : i64, tpu.core_type = #tpu.core_type<tc>, window_params = [{transform_indices = @transform_0, window_bounds = array<i64: 8, 32>}, {pipeline_mode = #tpu.pipeline_mode<synchronous>, transform_indices = @transform_1, window_bounds = array<i64: 32, 32>}, {pipeline_mode = #tpu.pipeline_mode<synchronous>, transform_indices = @transform_2, window_bounds = array<i64: 1, 32>}, {pipeline_mode = #tpu.pipeline_mode<synchronous>, transform_indices = @transform_3, window_bounds = array<i64: 32, 32>}, {pipeline_mode = #tpu.pipeline_mode<synchronous>, transform_indices = @transform_4, window_bounds = array<i64: 1, 32>}, {pipeline_mode = #tpu.pipeline_mode<synchronous>, transform_indices = @transform_5, window_bounds = array<i64: 32, 4>}, {pipeline_mode = #tpu.pipeline_mode<synchronous>, transform_indices = @transform_6, window_bounds = array<i64: 1, 4>}, {transform_indices = @transform_7, window_bounds = array<i64: 8, 4>}]} {
    %c0 = arith.constant 0 : index
    %c0_0 = arith.constant 0 : index
    %0 = vector.load %arg1[%c0, %c0_0] : memref<8x32xf32, #tpu.memory_space<vmem>>, vector<8x32xf32>
    %c0_1 = arith.constant 0 : index
    %c0_2 = arith.constant 0 : index
    %1 = vector.load %arg2[%c0_1, %c0_2] : memref<32x32xf32, #tpu.memory_space<vmem>>, vector<32x32xf32>
    %cst = arith.constant dense<0.000000e+00> : vector<8x32xf32>
    %2 = tpu.matmul %0, %1, %cst {dimension_numbers = #tpu.dot_dimension_numbers<[1], [0], [0], [1], [0, 0, 1, 1], [], []>} : vector<8x32xf32>, vector<32x32xf32>, vector<8x32xf32> -> vector<8x32xf32>
    %c0_3 = arith.constant 0 : index
    %c0_4 = arith.constant 0 : index
    %3 = vector.load %arg3[%c0_3, %c0_4] : memref<1x32xf32, #tpu.memory_space<vmem>>, vector<1x32xf32>
    %4 = vector.broadcast %3 : vector<1x32xf32> to vector<8x32xf32>
    %5 = arith.addf %2, %4 : vector<8x32xf32>
    %cst_5 = arith.constant 0.000000e+00 : f32
    %6 = vector.broadcast %cst_5 : f32 to vector<8x32xf32>
    %7 = arith.maximumf %5, %6 : vector<8x32xf32>
    %c0_6 = arith.constant 0 : index
    %c0_7 = arith.constant 0 : index
    %8 = vector.load %arg4[%c0_6, %c0_7] : memref<32x32xf32, #tpu.memory_space<vmem>>, vector<32x32xf32>
    %cst_8 = arith.constant dense<0.000000e+00> : vector<8x32xf32>
    %9 = tpu.matmul %7, %8, %cst_8 {dimension_numbers = #tpu.dot_dimension_numbers<[1], [0], [0], [1], [0, 0, 1, 1], [], []>} : vector<8x32xf32>, vector<32x32xf32>, vector<8x32xf32> -> vector<8x32xf32>
    %c0_9 = arith.constant 0 : index
    %c0_10 = arith.constant 0 : index
    %10 = vector.load %arg5[%c0_9, %c0_10] : memref<1x32xf32, #tpu.memory_space<vmem>>, vector<1x32xf32>
    %11 = vector.broadcast %10 : vector<1x32xf32> to vector<8x32xf32>
    %12 = arith.addf %9, %11 : vector<8x32xf32>
    %cst_11 = arith.constant 0.000000e+00 : f32
    %13 = vector.broadcast %cst_11 : f32 to vector<8x32xf32>
    %14 = arith.maximumf %12, %13 : vector<8x32xf32>
    %c0_12 = arith.constant 0 : index
    %c0_13 = arith.constant 0 : index
    %15 = vector.load %arg6[%c0_12, %c0_13] : memref<32x4xf32, #tpu.memory_space<vmem>>, vector<32x4xf32>
    %cst_14 = arith.constant dense<0.000000e+00> : vector<8x4xf32>
    %16 = tpu.matmul %14, %15, %cst_14 {dimension_numbers = #tpu.dot_dimension_numbers<[1], [0], [0], [1], [0, 0, 1, 1], [], []>} : vector<8x32xf32>, vector<32x4xf32>, vector<8x4xf32> -> vector<8x4xf32>
    %c0_15 = arith.constant 0 : index
    %c0_16 = arith.constant 0 : index
    %17 = vector.load %arg7[%c0_15, %c0_16] : memref<1x4xf32, #tpu.memory_space<vmem>>, vector<1x4xf32>
    %18 = vector.broadcast %17 : vector<1x4xf32> to vector<8x4xf32>
    %19 = arith.addf %16, %18 : vector<8x4xf32>
    %c0_17 = arith.constant 0 : index
    %c0_18 = arith.constant 0 : index
    %20 = vector.load %arg8[%c0_17, %c0_18] : memref<8x4xf32, #tpu.memory_space<vmem>>, vector<8x4xf32>
    tpu.vector_store %arg8[%c0_17, %c0_18], %19 {strides = array<i32>} : memref<8x4xf32, #tpu.memory_space<vmem>>, vector<8x4xf32>,
    return
  }
  func.func @transform_0(%arg0: i32) -> (i32, i32) {
    %c0_i32 = arith.constant 0 : i32
    %c0_i32_0 = arith.constant 0 : i32
    return %arg0, %c0_i32 : i32, i32
  }
  func.func @transform_1(%arg0: i32) -> (i32, i32) {
    %c0_i32 = arith.constant 0 : i32
    %c0_i32_0 = arith.constant 0 : i32
    %c0_i32_1 = arith.constant 0 : i32
    return %c0_i32, %c0_i32_0 : i32, i32
  }
  func.func @transform_2(%arg0: i32) -> (i32, i32) {
    %c0_i32 = arith.constant 0 : i32
    %c0_i32_0 = arith.constant 0 : i32
    %c0_i32_1 = arith.constant 0 : i32
    return %c0_i32, %c0_i32_0 : i32, i32
  }
  func.func @transform_3(%arg0: i32) -> (i32, i32) {
    %c0_i32 = arith.constant 0 : i32
    %c0_i32_0 = arith.constant 0 : i32
    %c0_i32_1 = arith.constant 0 : i32
    return %c0_i32, %c0_i32_0 : i32, i32
  }
  func.func @transform_4(%arg0: i32) -> (i32, i32) {
    %c0_i32 = arith.constant 0 : i32
    %c0_i32_0 = arith.constant 0 : i32
    %c0_i32_1 = arith.constant 0 : i32
    return %c0_i32, %c0_i32_0 : i32, i32
  }
  func.func @transform_5(%arg0: i32) -> (i32, i32) {
    %c0_i32 = arith.constant 0 : i32
    %c0_i32_0 = arith.constant 0 : i32
    %c0_i32_1 = arith.constant 0 : i32
    return %c0_i32, %c0_i32_0 : i32, i32
  }
  func.func @transform_6(%arg0: i32) -> (i32, i32) {
    %c0_i32 = arith.constant 0 : i32
    %c0_i32_0 = arith.constant 0 : i32
    %c0_i32_1 = arith.constant 0 : i32
    return %c0_i32, %c0_i32_0 : i32, i32
  }
  func.func @transform_7(%arg0: i32) -> (i32, i32) {
    %c0_i32 = arith.constant 0 : i32
    %c0_i32_0 = arith.constant 0 : i32
    return %arg0, %c0_i32 : i32, i32
  }
}

</mosaic_0001>

<bundles_post_ra>
// kernel: tpu_custom_call.1
= control target key start
LH: loop header
LB: loop body
LE: loop exit
PB: predicated region body
PF: predicated region fallthrough
CT: control target
= control target key end

     0   :  { %12 = vsyncpa [#allocation3], 0  ;;  %s1104_s0 = inlined_call_operand.hbm [shape: f32[16,32], index: 0, kind: input, shape index: {}]   ;;  %s1105_s1 = inlined_call_operand.vmem [shape: f32[32,32], index: 1, kind: input, shape index: {}]   ;;  %s1106_s2 = inlined_call_operand.vmem [shape: f32[1,32], index: 2, kind: input, shape index: {}]   ;;  %s1107_s3 = inlined_call_operand.hbm [shape: f32[32,32], index: 3, kind: input, shape index: {}]   ;;  %s1108_s4 = inlined_call_operand.vmem [shape: f32[1,32], index: 4, kind: input, shape index: {}]   ;;  %s1109_s5 = inlined_call_operand.vmem [shape: f32[32,4], index: 5, kind: input, shape index: {}]   ;;  %s1110_s6 = inlined_call_operand.vmem [shape: f32[1,4], index: 6, kind: input, shape index: {}]   ;;  %s1111_s7 = inlined_call_operand.vmem [shape: f32[16,4], index: 7, kind: output, shape index: {}]  }
   0x1   :  { %14 = vsyncpa [#allocation3 + $0x1], 0 }
   0x2   :  { %15 = vsyncpa [#allocation5], 0  ;;  %s926_s24 = smov 0   ;;  %s928_s25 = smov 0  }
   0x3   :  { %s930_s26 = smov 0   ;;  %s932_s27 = smov 0  }
   0x4 LB: > { %s945_s28 = sadd.s32 4294967295, %s877_s27   ;;  %p41_p0 = scmp.ne.s32.totalorder %s869_s25, %s865_s24  ;;  %s877_s27 = sphi %s932_s27, %s1126_s27   ;;  %s873_s26 = sphi %s930_s26, %s1125_s26   ;;  %s869_s25 = sphi %s928_s25, %s1124_s25   ;;  %s865_s24 = sphi %s926_s24, %s1123_s24  }
   0x5   : > { %p1112_p1 = scmp.eq.s32.totalorder %s945_s28, 0  ;;  %p643_p2 = scmp.ge.s32.totalorder %s877_s27, 1 }
   0x6   : > { %p204_p3 = scmp.lt.s32.totalorder %s877_s27, 3  ;;  %s879_s8 = smov [#allocation4]  }
   0x7   : > { %p953_p4 = por %p1112_p1, %p41_p0  ;;  %s222_s9 = sshll.u32 %s879_s8, 4  ;;  %s223_s9 = int_to_ptr.vmem [resolvable:$true] %s222_s9 }
   0x8   : > { %p957_p5 = pnand %p643_p2, %p204_p3  ;;  %s970_s11 = sadd.s32 1, %s877_s27  }
   0x9   : > { %s1115_s29 = scalar_select %p953_p4, 1, 0 }
   0xa   : > { %s1116_s30 = scalar_select %p957_p5, 1, 0 }
   0xb   : > { %p732_p6 = pneg %p957_p5  ;;  %s28_s12 = sadd.s32 1, %s873_s26 }
   0xc   : > { %s25_s13 = ssub.s32 %s877_s27, %s970_s11  ;;  %s781_s16 = scalar_lea.hbm %s1107_s3, 512 }
   0xd   : > { %p965_p7 = pnand %p732_p6, %p1112_p1  ;;  %p782_p8 = scmp.ne.s32.totalorder %s1107_s3, %s781_s16 }
   0xe   : > { %p788_p12 = scmp.lt.u32.totalorder %s781_s16, %s1107_s3 }
   0xf   : > { %p783_p9 = pneg %p965_p7 }
  0x11   : > { %p784_p10 = pnand %p783_p9, %p782_p8 }
  0x13   : > { %p785_p11 = pneg %p784_p10 }
  0x15   : > { %p790_p13 = pnand %p788_p12, %p785_p11 }
  0x17   : > { %793 = shalt.err (!%p790_p13)
}
  0x18   : > { %s794_s21 = scalar_lea.vmem %s223_s9, 512  ;;  %p802_p6 = scmp.lt.s32.totalorder %s223_s9, %s223_s9 }
  0x19   : > { %p795_p0 = scmp.ne.s32.totalorder %s223_s9, %s794_s21  ;;  %p803_p1 = scmp.lt.s32.totalorder %s794_s21, %s794_s21 }
  0x1b   : > { %p797_p2 = pnand %p795_p0, %p783_p9  ;;  %p804_p4 = por %p803_p1, %p802_p6 }
  0x1d   : > { %p798_p3 = pneg %p797_p2 }
  0x1f   : > { %p805_p5 = pnand %p804_p4, %p798_p3 }
  0x21   : > { %808 = shalt.err (!%p805_p5)
}
  0x22   : > { %s880_s22 = smov 128   ;;  %s881_s23 = smov 8  }
  0x23   : > { %735 = dma.hbm_to_vmem [thread:$0]  (!%p965_p7), %s1107_s3, 512, %s223_s9, [#allocation5], %s880_s22, %s880_s22, %s881_s23  }
  0x24   : > { %p26_p8 = scmp.eq.s32.totalorder %s25_s13, 0  ;;  %p35_p9 = scmp.ne.s32.totalorder %s873_s26, %s869_s25 }
  0x25   : > { %p36_p1 = scmp.eq.s32.totalorder %s877_s27, 0  ;;  %p741_p4 = scmp.lt.s32.totalorder %s877_s27, 2 }
  0x26   : > { %s996_s14 = scalar_select %p26_p8, %s873_s26, %s28_s12  }
  0x27   : > { %p37_p5 = por %p36_p1, %p35_p9  ;;  %s245_s15 = sand.u32 1, %s873_s26  }
  0x28   : > { %s646_s16 = sshll.u32 %s245_s15, 3  ;;  %s647_s17 = sshll.u32 %s877_s27, 7 }
  0x29   : > { %s1003_s20 = scalar_lea.hbm %s1104_s0, %s647_s17  ;;  %s249_s9 = scalar_lea.vmem [#allocation2], %s646_s16 }
  0x2a   : > { %s256_s10 = sshll.u32 %s249_s9, 4  ;;  %p1007_p7 = pnand %p741_p4, %p37_p5  ;;  %s1005_s10 = int_to_ptr.vmem [resolvable:$true] %s256_s10 }
  0x2b   : > { %s246_s27 = scalar_lea.sflag [#allocation3], %s245_s15  ;;  %s809_s13 = scalar_lea.hbm %s1003_s20, 128 }
  0x2c   : > { %p810_p10 = scmp.ne.s32.totalorder %s1003_s20, %s809_s13  ;;  %p811_p11 = pneg %p1007_p7 }
  0x2d   : > { %s814_s23 = scalar_lea.hbm %s1104_s0, 256  ;;  %p815_p0 = scmp.lt.u32.totalorder %s1003_s20, %s1104_s0 }
  0x2e   : > { %p812_p12 = pnand %p811_p11, %p810_p10  ;;  %p816_p2 = scmp.lt.u32.totalorder %s814_s23, %s809_s13 }
  0x2f   : > { %p818_p6 = scmp.lt.u32.totalorder %s809_s13, %s1003_s20 }
  0x30   : > { %p813_p13 = pneg %p812_p12  ;;  %p817_p3 = por %p816_p2, %p815_p0 }
  0x32   : > { %p819_p8 = por %p818_p6, %p817_p3 }
  0x34   : > { %p820_p9 = pnand %p819_p8, %p813_p13 }
  0x36   : > { %823 = shalt.err (!%p820_p9)
}
  0x37   : > { %s824_s15 = scalar_lea.vmem %s1005_s10, 128  ;;  %s882_s16 = smov [#allocation2]  }
  0x38   : > { %p825_p1 = scmp.ne.s32.totalorder %s1005_s10, %s824_s15  ;;  %s829_s17 = sshll.u32 %s882_s16, 4  ;;  %s830_s17 = int_to_ptr.vmem [resolvable:$false] %s829_s17 }
  0x39   : > { %s831_s18 = scalar_lea.vmem %s830_s17, 256  ;;  %p832_p10 = scmp.lt.s32.totalorder %s1005_s10, %s830_s17 }
  0x3a   : > { %p827_p4 = pnand %p825_p1, %p811_p11  ;;  %p833_p12 = scmp.lt.s32.totalorder %s831_s18, %s824_s15 }
  0x3c   : > { %p828_p5 = pneg %p827_p4  ;;  %p834_p0 = por %p833_p12, %p832_p10 }
  0x3e   : > { %p835_p2 = pnand %p834_p0, %p828_p5 }
  0x40   : > { %838 = shalt.err (!%p835_p2)
}
  0x41   : > { %739 = dma.hbm_to_vmem [thread:$0]  (!%p1007_p7), %s1003_s20, 128, %s1005_s10, %s246_s27  }
  0x42   : > { %p1119_p13 = scmp.ne.s32.totalorder %s1116_s30, 0 }
  0x43   : > { %s267_s19 = sand.u32 (!%p1119_p13), 1, %s869_s25   ;;  %p1120_p11 = scmp.ne.s32.totalorder (!%p1119_p13), %s1115_s29, 0 }
  0x44   : > { %265 = sbr.rel (%p1119_p13) target bundleno = 736 (0x2e0), region = 48  ;;  %s649_s9 = sshll.u32 (!%p1119_p13), %s267_s19, 3 }
  0x45   : > { %s268_s13 = scalar_lea.sflag (!%p1119_p13), [#allocation3], %s267_s19  ;;  %s271_s21 = scalar_lea.vmem (!%p1119_p13), [#allocation2], %s649_s9 }
  0x4b   : > { %856 = dma.done.wait (%p1120_p11), %s268_s13, 128  }
  0x4c   : > { %858 = vsyncadd (%p1120_p11), %s268_s13, 4294967168  ;;  %p1121_p3 = scmp.eq.s32.totalorder %s945_s28, 0 }
  0x4e   : > { %860 = dma.done.wait (%p1121_p3), [#allocation5], 512   ;;  %p1122_p6 = pmov %p1121_p3 }
  0x4f   : > { %v883_v0 = vmov 0.0|0.0   ;;  %vm884_vm0 = vmmov 0   ;;  %v885_v1 = vmov 0.0   ;;  %v310_v2 = vld [vmem:[%s1105_s1] sm:$0xff]  ;;  %v311_v3 = vld [vmem:[%s1105_s1 + $0x8] sm:$0xff]  ;;  %v312_v4 = vld [vmem:[%s1105_s1 + $0x10] sm:$0xff] }
  0x50   : > { %862 = vsyncadd (%p1122_p6), [#allocation5], 4294966784  ;;  %708 = vmatprep.subr.bf16.mxu0 %v883_v0  ;;  %683 = vmatprep.mubr.msk.f32.mxu0 %vm884_vm0, %v885_v1  ;;  %v709_v5 = vpack.c.bf16 %v311_v3, %v310_v2  ;;  %v313_v6 = vld [vmem:[%s1105_s1 + $0x18] sm:$0xff]  ;;  %v396_v7 = vld [vmem:[#allocation4] sm:$0xff]  ;;  %vm321_vm1 = vcmask 261120   ;;  %p305_p7 = scmp.lt.s32.totalorder %s945_s28, 1 }
  0x51   : > { %714 = vmatprep.subr.bf16.mxu1 %v883_v0  ;;  %694 = vmatprep.mubr.msk.f32.mxu1 %vm884_vm0, %v885_v1  ;;  %v397_v8 = vld [vmem:[#allocation4 + $0x8] sm:$0xff]  ;;  %v712_v9 = vpack.c.bf16 %v313_v6, %v312_v4  ;;  %v309_v11 = vld [vmem:[%s271_s21] sm:$0xff]  ;;  %v483_v23 = vld [vmem:[%s1109_s5 + $0x10] sm:$0xff]  ;;  %vm565_vm2 = vcmask 31744  }
  0x52   : > { %710 = vmatpush3.bf16.msra.mxu0 %v709_v5  ;;  %v715_v10 = vpack.c.bf16 %v397_v8, %v396_v7  ;;  %v398_v12 = vld [vmem:[#allocation4 + $0x10] sm:$0xff]  ;;  %v399_v13 = vld [vmem:[#allocation4 + $0x18] sm:$0xff]  ;;  %v484_v24 = vld [vmem:[%s1109_s5 + $0x18] sm:$0xff]  ;;  %s1128_s28 = smov (!%p305_p7, %s945_s28), 1 }
  0x53   : > { %711 = vmatprep.subr.bf16.mxu0 %v883_v0  ;;  %v718_v14 = vpack.c.bf16 %v399_v13, %v398_v12  ;;  %v481_v15 = vld [vmem:[%s1109_s5] sm:$0xff]  ;;  %v482_v16 = vld [vmem:[%s1109_s5 + $0x8] sm:$0xff]  ;;  %v724_v25 = vpack.c.bf16 %v484_v24, %v483_v23  ;;  %s651_s29 = sshll.u32 %s1128_s28, 3 }
  0x54   : > { %716 = vmatpush3.bf16.msra.mxu1 %v715_v10  ;;  %v721_v17 = vpack.c.bf16 %v482_v16, %v481_v15  ;;  %v652_v18 = vld [vmem:[%s1106_s2] ss:$0 sm:$0xff]  ;;  %s308_s23 = scalar_lea.vmem %s1111_s7, %s651_s29 }
  0x55   : > { %717 = vmatprep.subr.bf16.mxu1 %v883_v0  ;;  %v654_v26 = vld [vmem:[%s1108_s4] ss:$0 sm:$0xff] }
  0x56   : > { %713 = vmatpush3.bf16.msra.mxu0 %v712_v9  ;;  %v656_v31 = vld [vmem:[%s1110_s6] ss:$0 sm:$0xff] }
  0x57   : > { %720 = vmatprep.subr.bf16.mxu0 %v883_v0 }
  0x58   : > { %719 = vmatpush3.bf16.msra.mxu1 %v718_v14 }
  0x59   : > { %684 = vmatmul.mubr.msk.f32.vlgmr.msra.gmra.mrb[0].mxu0 %vm321_vm1, %v309_v11 }
  0x5a   : > { %705 = vmatprep.mubr.msk.f32.mxu0 %vm884_vm0, %v885_v1  ;;  %722 = vmatpush3.bf16.msra.mxu0 %v721_v17 }
  0x5b   : > { %723 = vmatprep.subr.bf16.mxu0 %v883_v0 }
  0x5e   : > { %725 = vmatpush3.bf16.msra.mxu0 %v724_v25 }
 0x12c   : > { %v391_v19 = vpop.f32.mrb[0].mxu0 }
 0x12d   : > { %v392_v20 = vadd.f32 %v652_v18, %v391_v19  ;;  %v685_v21 = vpop.f32.mrb[1].mxu0 }
 0x12f   : > { %v395_v22 = vmax.f32 %v392_v20, 0.0 }
 0x131   : > { %695 = vmatmul.mubr.msk.f32.vlgmr.msra.gmra.mrb[0].mxu1 %vm321_vm1, %v395_v22 }
 0x204   : > { %v476_v27 = vpop.f32.mrb[0].mxu1 }
 0x205   : > { %v477_v28 = vadd.f32 %v654_v26, %v476_v27  ;;  %v696_v29 = vpop.f32.mrb[1].mxu1 }
 0x207   : > { %v480_v30 = vmax.f32 %v477_v28, 0.0 }
 0x209   : > { %706 = vmatmul.mubr.msk.f32.vlgmr.msra.gmra.mrb[2].mxu0 %vm321_vm1, %v480_v30 }
 0x2dc   : > { %v561_v32 = vpop.f32.mrb[2].mxu0 }
 0x2dd   : > { %v562_v33 = vadd.f32 %v656_v31, %v561_v32  ;;  %v707_v34 = vpop.f32.mrb[3].mxu0 }
 0x2df   : > { %566 = vst.msk [vmem:[%s308_s23] sm:$0xff] %vm565_vm2, %v562_v33 }
 0x2e0 PF: > { %p18_p8 = scmp.ge.s32.totalorder %s970_s11, 4   ;;  %s1123_s24 = smov %s869_s25 }
 0x2e1   : > { %s1124_s25 = smov %s873_s26  ;;  %s1125_s26 = smov %s996_s14 }
 0x2e2   : > { %s1126_s27 = smov %s970_s11  ;;  %20 = sbr.rel (!%p18_p8) target bundleno = 4 (0x4), region = 92 }
 0x2e9   :  { %586 = vsyncpa [#allocation3], 1 }
 0x2ea   :  { %588 = vsyncpa [#allocation3 + $0x1], 1 }
 0x2eb   :  { %589 = vsyncpa [#allocation5], 1 }

</bundles_post_ra>
